<compile_context>
chip_gen: v5e
topology: v5e:2x2
jax: 0.10.0
libtpu: 0.0.40
codegen_flags: <defaults>
</compile_context>

<pallas_src>
import functools

import jax
import jax.numpy as jnp
import numpy as np
from jax.experimental import pallas as pl
from jax.experimental.pallas import tpu as pltpu


# ----------------------------------------------------------------------------
# Kernel
# ----------------------------------------------------------------------------
def _sgns_kernel(ivec_ref, ovec_ref, nvec_ref, out_ref, scores_ref, *,
                 n_context, o_chunk, n_chunk):
    """One batch tile of the SGNS loss.

    ivec_ref:   (TB, D)     bf16 center-word vectors
    ovec_ref:   (TB, C, D)  bf16 context vectors
    nvec_ref:   (TB, N, D)  bf16 negative-sample vectors (N = C * n_negs)
    out_ref:    (TB, 1)     f32 per-row loss  -(sum_m logsig) / C
    scores_ref: (TB, C+N)   f32 VMEM scratch for the dot-product scores
    """
    # Hoisted once: f32 center vectors shaped for broadcast against (TB, m, D).
    ivb = ivec_ref[...].astype(jnp.float32)[:, None, :]            # (TB, 1, D)

    def fill_scores(ref, col_off, chunk, negate):
        # Chunked over the context/negative axis so f32 temporaries stay a few
        # hundred KiB instead of a full-tile (TB, M, D) f32 spill.
        m = ref.shape[1]
        for c0 in range(0, m, chunk):
            blk = ref[:, c0:c0 + chunk, :].astype(jnp.float32)      # (TB, ch, D)
            # Exact products of bf16 values, accumulated in f32 over D.
            s = jnp.sum(blk * ivb, axis=-1)                         # (TB, ch)
            scores_ref[:, col_off + c0:col_off + c0 + chunk] = (-s if negate else s)

    fill_scores(ovec_ref, 0, o_chunk, negate=False)
    # Reference does bmm(-nvectors, ivectors): fold the sign into the scores.
    fill_scores(nvec_ref, n_context, n_chunk, negate=True)

    # Stable log-sigmoid: log(sigmoid(x)) = min(x, 0) - log(1 + exp(-|x|)).
    # The small-y branch recovers log1p precision for large |x| using only
    # exp/log primitives (abs error vs true log1p < 1e-12 there).
    x = scores_ref[...]                                             # (TB, C+N)
    y = jnp.exp(-jnp.abs(x))                                        # in (0, 1]
    log1p_y = jnp.where(y < 1e-4, y - 0.5 * y * y, jnp.log(1.0 + y))
    log_sig = jnp.minimum(x, 0.0) - log1p_y

    # oloss = mean over C;  nloss = (sum over K per context).mean over C
    #       = sum over all N negatives / C
    # => per-row loss = -(sum over all C+N columns) / C.
    out_ref[...] = -jnp.sum(log_sig, axis=1, keepdims=True) / jnp.float32(n_context)


# ----------------------------------------------------------------------------
# Sizing helpers
# ----------------------------------------------------------------------------
def _vmem_capacity_bytes():
    try:
        return int(pltpu.get_tpu_info().vmem_capacity_bytes)
    except Exception:
        return 64 * 1024 * 1024        # conservative (v7x per-TensorCore)


def _choose_tile_b(batch, m_total, d, itemsize, vmem_cap):
    """Generation-aware batch tile: big blocks on 128 MiB VMEM (v5e/v6e), smaller
    on v7x's 64 MiB/TC; always >= 2 grid tiles when the batch allows (megacore)."""
    row_bytes = max(1, (1 + m_total) * d * itemsize)     # ivec + ovec + nvec per row
    # Budget: double-buffered input blocks (2x) + chunked f32 temps + scratch + headroom.
    block_budget = min(24 << 20, max(2 << 20, (int(0.55 * vmem_cap) - (8 << 20)) // 2))
    tb = block_budget // row_bytes
    if batch >= 16:
        tb = min(tb, -(-batch // 2))                     # >= 2 tiles -> both v7x TCs busy
    tb = min(tb, ((batch + 7) // 8) * 8)                 # never coarser than the batch
    tb = min(tb, 4096)
    tb = max(8, (tb // 8) * 8)
    return int(tb)


def _pick_chunk(m, cap):
    """Largest divisor of m that is <= cap, preferring sublane-aligned (x8) chunks."""
    cap = max(1, min(m, cap))
    divs = [c for c in range(1, cap + 1) if m % c == 0]
    mult8 = [c for c in divs if c % 8 == 0]
    return (mult8 or divs)[-1]


# ----------------------------------------------------------------------------
# Wrapper
# ----------------------------------------------------------------------------
def sgns_loss_pallas(ivec, ovec, nvec, *, compute_dtype=jnp.bfloat16,
                     tile_b=None, score_chunk_bytes=2 * 1024 * 1024,
                     vmem_limit_bytes=None):
    """-(oloss + nloss).mean() of the SGNS forward, hot path in Pallas."""
    B, D = ivec.shape
    Bo, C, Do = ovec.shape
    Bn, N, Dn = nvec.shape
    assert (Bo, Do) == (B, D) and (Bn, Dn) == (B, D) and N % C == 0

    # Inputs should already arrive in compute_dtype (bf16 tables); only cast if not.
    def _as_compute(x):
        return x if x.dtype == compute_dtype else x.astype(compute_dtype)
    ivec_c, ovec_c, nvec_c = map(_as_compute, (ivec, ovec, nvec))

    itemsize = jnp.dtype(compute_dtype).itemsize
    vmem_cap = _vmem_capacity_bytes()

    if tile_b is None:
        tile_b = _choose_tile_b(B, C + N, D, itemsize, vmem_cap)
    tile_b = max(8, (int(tile_b) // 8) * 8)
    num_tiles = -(-B // tile_b)                          # ragged last tile allowed

    # Chunk size along the context/negative axis (bounds in-kernel f32 temps).
    chunk_cap = max(1, int(score_chunk_bytes) // (tile_b * D * 4))
    o_chunk = _pick_chunk(C, chunk_cap)
    n_chunk = _pick_chunk(N, chunk_cap)

    if vmem_limit_bytes is None:
        vmem_limit_bytes = min(vmem_cap * 3 // 4, 100 * 1024 * 1024)

    kernel = functools.partial(_sgns_kernel, n_context=C,
                               o_chunk=o_chunk, n_chunk=n_chunk)

    per_row = pl.pallas_call(
        kernel,
        out_shape=jax.ShapeDtypeStruct((B, 1), jnp.float32),
        grid=(num_tiles,),
        in_specs=[
            pl.BlockSpec((tile_b, D), lambda i: (i, 0)),
            pl.BlockSpec((tile_b, C, D), lambda i: (i, 0, 0)),
            pl.BlockSpec((tile_b, N, D), lambda i: (i, 0, 0)),
        ],
        out_specs=pl.BlockSpec((tile_b, 1), lambda i: (i, 0)),
        scratch_shapes=[pltpu.VMEM((tile_b, C + N), jnp.float32)],
        compiler_params=pltpu.CompilerParams(
            dimension_semantics=("parallel",),           # megacore-shardable
            vmem_limit_bytes=int(vmem_limit_bytes),
        ),
    )(ivec_c, ovec_c, nvec_c)

    # The output array has exactly B rows (ragged-tile writes past B are masked),
    # so the batch mean is just sum / B.
    return jnp.sum(per_row[:, 0]) / jnp.float32(B)


# ----------------------------------------------------------------------------
# Pure-JAX reference mirroring the torch forward (same bf16 inputs, f32 math)
# ----------------------------------------------------------------------------
def sgns_loss_reference(ivec, ovec, nvec):
    ivec = ivec.astype(jnp.float32)
    ovec = ovec.astype(jnp.float32)
    nvec = nvec.astype(jnp.float32)
    C = ovec.shape[1]
    K = nvec.shape[1] // C
    o_scores = jnp.sum(ovec * ivec[:, None, :], axis=-1)           # (B, C)
    n_scores = -jnp.sum(nvec * ivec[:, None, :], axis=-1)          # (B, C*K)
    oloss = jnp.mean(jax.nn.log_sigmoid(o_scores), axis=1)
    nloss = jnp.mean(
        jnp.sum(jax.nn.log_sigmoid(n_scores).reshape(-1, C, K), axis=2), axis=1)
    return -jnp.mean(oloss + nloss)


# ----------------------------------------------------------------------------
# Glue: embedding gathers (forward_i / forward_o) + negative sampling
# ----------------------------------------------------------------------------
def _make_inputs(key, vocab_size, embed_dim, batch, context, n_negs):
    k_emb_i, k_emb_o, k_iword, k_owords, k_nwords = jax.random.split(key, 5)
    # Tables stored in bf16 -> the gather already yields the kernel's compute
    # dtype; no extra f32->bf16 pass over the gathered (B, M, D) activations.
    emb_i = (jax.random.normal(k_emb_i, (vocab_size, embed_dim), jnp.float32)
             * 0.1).astype(jnp.bfloat16)
    emb_o = (jax.random.normal(k_emb_o, (vocab_size, embed_dim), jnp.float32)
             * 0.1).astype(jnp.bfloat16)
    iword = jax.random.randint(k_iword, (batch,), 0, vocab_size, dtype=jnp.int32)
    owords = jax.random.randint(k_owords, (batch, context), 0, vocab_size,
                                dtype=jnp.int32)
    # weights is None in the module -> uniform negatives in [0, vocab_size - 1)
    nwords = jax.random.randint(k_nwords, (batch, context * n_negs), 0,
                                vocab_size - 1, dtype=jnp.int32)
    ivec = emb_i[iword]          # (B, D)      forward_i
    ovec = emb_o[owords]         # (B, C, D)   forward_o
    nvec = emb_o[nwords]         # (B, C*K, D) forward_o (negation happens in-kernel)
    return ivec, ovec, nvec


if __name__ == "__main__":
    # Small, deterministic shapes consistent with the module; D is a multiple of
    # 128 so vregs / DMA words are lane-dense.
    vocab_size = 100
    embed_dim = 128
    batch = 2
    context = 8
    n_negs = 4

    key = jax.random.PRNGKey(0)
    ivec, ovec, nvec = _make_inputs(key, vocab_size, embed_dim, batch, context,
                                    n_negs)
    loss = sgns_loss_pallas(ivec, ovec, nvec)
    jax.block_until_ready(loss)
    ref = sgns_loss_reference(ivec, ovec, nvec)
    np.testing.assert_allclose(np.asarray(loss), np.asarray(ref),
                               rtol=1e-5, atol=1e-5)

    # Ragged multi-tile + chunked-scores path: B=20 with tile_b=8 -> 3 tiles
    # (last tile has only 4 valid rows, no jnp.pad anywhere), and a small
    # score_chunk_bytes forces the in-kernel M-chunk loop (nvec in 4 chunks).
    ivec2, ovec2, nvec2 = _make_inputs(jax.random.PRNGKey(1), vocab_size, 64, 20,
                                       context, n_negs)
    loss2 = sgns_loss_pallas(ivec2, ovec2, nvec2, tile_b=8,
                             score_chunk_bytes=16 * 1024)
    jax.block_until_ready(loss2)
    ref2 = sgns_loss_reference(ivec2, ovec2, nvec2)
    np.testing.assert_allclose(np.asarray(loss2), np.asarray(ref2),
                               rtol=1e-5, atol=1e-5)

    print("KERNEL_OK")
</pallas_src>

<mosaic_0001>
module attributes {stable_mosaic.version = 11 : i64} {
  func.func @_sgns_kernel(%arg0: i32, %arg1: memref<8x128xbf16, #tpu.memory_space<vmem>>, %arg2: memref<8x8x128xbf16, #tpu.memory_space<vmem>>, %arg3: memref<8x32x128xbf16, #tpu.memory_space<vmem>>, %arg4: memref<8x1xf32, #tpu.memory_space<vmem>>, %arg5: memref<8x40xf32, #tpu.memory_space<vmem>>) attributes {dimension_semantics = [#tpu.dimension_semantics<parallel>], iteration_bounds = array<i64: 1>, scalar_prefetch = 0 : i64, scratch_operands = 1 : i64, tpu.core_type = #tpu.core_type<tc>, window_params = [{transform_indices = @transform_0, window_bounds = array<i64: 8, 128>}, {transform_indices = @transform_1, window_bounds = array<i64: 8, 8, 128>}, {transform_indices = @transform_2, window_bounds = array<i64: 8, 32, 128>}, {transform_indices = @transform_3, window_bounds = array<i64: 8, 1>}]} {
    %c0 = arith.constant 0 : index
    %c0_0 = arith.constant 0 : index
    %0 = vector.load %arg1[%c0, %c0_0] : memref<8x128xbf16, #tpu.memory_space<vmem>>, vector<8x128xbf16>
    %1 = arith.extf %0 : vector<8x128xbf16> to vector<8x128xf32>
    %2 = vector.shape_cast %1 : vector<8x128xf32> to vector<8x1x128xf32>
    %c0_1 = arith.constant 0 : index
    %c0_2 = arith.constant 0 : index
    %c0_3 = arith.constant 0 : index
    %3 = vector.load %arg2[%c0_1, %c0_2, %c0_3] : memref<8x8x128xbf16, #tpu.memory_space<vmem>>, vector<8x8x128xbf16>
    %4 = arith.extf %3 : vector<8x8x128xbf16> to vector<8x8x128xf32>
    %5 = vector.broadcast %2 : vector<8x1x128xf32> to vector<8x8x128xf32>
    %6 = arith.mulf %4, %5 : vector<8x8x128xf32>
    %cst = arith.constant dense<0.000000e+00> : vector<8x8xf32>
    %7 = vector.multi_reduction <add>, %6, %cst [2] : vector<8x8x128xf32> to vector<8x8xf32>
    %c0_4 = arith.constant 0 : index
    %c0_5 = arith.constant 0 : index
    %8 = vector.load %arg5[%c0_4, %c0_5] : memref<8x40xf32, #tpu.memory_space<vmem>>, vector<8x8xf32>
    tpu.vector_store %arg5[%c0_4, %c0_5], %7 {strides = array<i32>} : memref<8x40xf32, #tpu.memory_space<vmem>>, vector<8x8xf32>,
    %c0_6 = arith.constant 0 : index
    %c0_7 = arith.constant 0 : index
    %c0_8 = arith.constant 0 : index
    %9 = vector.load %arg3[%c0_6, %c0_7, %c0_8] : memref<8x32x128xbf16, #tpu.memory_space<vmem>>, vector<8x32x128xbf16>
    %10 = arith.extf %9 : vector<8x32x128xbf16> to vector<8x32x128xf32>
    %11 = vector.broadcast %2 : vector<8x1x128xf32> to vector<8x32x128xf32>
    %12 = arith.mulf %10, %11 : vector<8x32x128xf32>
    %cst_9 = arith.constant dense<0.000000e+00> : vector<8x32xf32>
    %13 = vector.multi_reduction <add>, %12, %cst_9 [2] : vector<8x32x128xf32> to vector<8x32xf32>
    %cst_10 = arith.constant 0.000000e+00 : f32
    %14 = vector.broadcast %cst_10 : f32 to vector<8x32xf32>
    %15 = arith.subf %14, %13 : vector<8x32xf32>
    %c0_11 = arith.constant 0 : index
    %c8 = arith.constant 8 : index
    %16 = vector.load %arg5[%c0_11, %c8] : memref<8x40xf32, #tpu.memory_space<vmem>>, vector<8x32xf32>
    tpu.vector_store %arg5[%c0_11, %c8], %15 {strides = array<i32>} : memref<8x40xf32, #tpu.memory_space<vmem>>, vector<8x32xf32>,
    %c0_12 = arith.constant 0 : index
    %c0_13 = arith.constant 0 : index
    %17 = vector.load %arg5[%c0_12, %c0_13] : memref<8x40xf32, #tpu.memory_space<vmem>>, vector<8x40xf32>
    %18 = math.absf %17 : vector<8x40xf32>
    %cst_14 = arith.constant 0.000000e+00 : f32
    %19 = vector.broadcast %cst_14 : f32 to vector<8x40xf32>
    %20 = arith.subf %19, %18 : vector<8x40xf32>
    %21 = math.exp %20 : vector<8x40xf32>
    %cst_15 = arith.constant 9.99999974E-5 : f32
    %22 = vector.broadcast %cst_15 : f32 to vector<8x40xf32>
    %23 = arith.cmpf olt, %21, %22 : vector<8x40xf32>
    %cst_16 = arith.constant 5.000000e-01 : f32
    %24 = vector.broadcast %cst_16 : f32 to vector<8x40xf32>
    %25 = arith.mulf %24, %21 : vector<8x40xf32>
    %26 = arith.mulf %25, %21 : vector<8x40xf32>
    %27 = arith.subf %21, %26 : vector<8x40xf32>
    %cst_17 = arith.constant 1.000000e+00 : f32
    %28 = vector.broadcast %cst_17 : f32 to vector<8x40xf32>
    %29 = arith.addf %28, %21 : vector<8x40xf32>
    %30 = math.log %29 : vector<8x40xf32>
    %31 = arith.select %23, %27, %30 : vector<8x40xi1>, vector<8x40xf32>
    %cst_18 = arith.constant 0.000000e+00 : f32
    %32 = vector.broadcast %cst_18 : f32 to vector<8x40xf32>
    %33 = arith.minimumf %17, %32 : vector<8x40xf32>
    %34 = arith.subf %33, %31 : vector<8x40xf32>
    %cst_19 = arith.constant dense<0.000000e+00> : vector<8xf32>
    %35 = vector.multi_reduction <add>, %34, %cst_19 [1] : vector<8x40xf32> to vector<8xf32>
    %36 = vector.shape_cast %35 : vector<8xf32> to vector<8x1xf32>
    %cst_20 = arith.constant 0.000000e+00 : f32
    %37 = vector.broadcast %cst_20 : f32 to vector<8x1xf32>
    %38 = arith.subf %37, %36 : vector<8x1xf32>
    %cst_21 = arith.constant 8.000000e+00 : f32
    %39 = vector.broadcast %cst_21 : f32 to vector<8x1xf32>
    %40 = arith.divf %38, %39 : vector<8x1xf32>
    %c0_22 = arith.constant 0 : index
    %c0_23 = arith.constant 0 : index
    %41 = vector.load %arg4[%c0_22, %c0_23] : memref<8x1xf32, #tpu.memory_space<vmem>>, vector<8x1xf32>
    tpu.vector_store %arg4[%c0_22, %c0_23], %40 {strides = array<i32>} : memref<8x1xf32, #tpu.memory_space<vmem>>, vector<8x1xf32>,
    return
  }
  func.func @transform_0(%arg0: i32) -> (i32, i32) {
    %c0_i32 = arith.constant 0 : i32
    %c0_i32_0 = arith.constant 0 : i32
    return %arg0, %c0_i32 : i32, i32
  }
  func.func @transform_1(%arg0: i32) -> (i32, i32, i32) {
    %c0_i32 = arith.constant 0 : i32
    %c0_i32_0 = arith.constant 0 : i32
    %c0_i32_1 = arith.constant 0 : i32
    return %arg0, %c0_i32, %c0_i32_0 : i32, i32, i32
  }
  func.func @transform_2(%arg0: i32) -> (i32, i32, i32) {
    %c0_i32 = arith.constant 0 : i32
    %c0_i32_0 = arith.constant 0 : i32
    %c0_i32_1 = arith.constant 0 : i32
    return %arg0, %c0_i32, %c0_i32_0 : i32, i32, i32
  }
  func.func @transform_3(%arg0: i32) -> (i32, i32) {
    %c0_i32 = arith.constant 0 : i32
    %c0_i32_0 = arith.constant 0 : i32
    return %arg0, %c0_i32 : i32, i32
  }
}

</mosaic_0001>

<bundles_post_ra>
// kernel: tpu_custom_call.1
= control target key start
LH: loop header
LB: loop body
LE: loop exit
PB: predicated region body
PF: predicated region fallthrough
CT: control target
= control target key end

     0   :  { %8 = vsyncpa [#allocation4], 0  ;;  %s977_s0 = inlined_call_operand.hbm [shape: bf16[2,128], index: 0, kind: input, shape index: {}]   ;;  %s978_s1 = inlined_call_operand.hbm [shape: bf16[2,8,128], index: 1, kind: input, shape index: {}]   ;;  %s979_s2 = inlined_call_operand.hbm [shape: bf16[2,32,128], index: 2, kind: input, shape index: {}]   ;;  %s980_s3 = inlined_call_operand.vmem [shape: f32[2,1], index: 3, kind: output, shape index: {}]  }
   0x1   :  { %9 = vsyncpa [#allocation6], 0 }
   0x2   :  { %13 = vsyncadd [#allocation4], 48  ;;  %s14_s14 = sshll.u32 %s977_s0, 4  ;;  %s765_s15 = smov [#allocation3]   ;;  %s15_s14 = int_to_ptr.hbm [resolvable:$true] %s14_s14 }
   0x3   :  { %s16_s16 = sshll.u32 %s765_s15, 4  ;;  %s766_s17 = smov 16   ;;  %s17_s16 = int_to_ptr.vmem [resolvable:$true] %s16_s16 }
   0x4   :  { %s767_s18 = smov 1  }
   0x5   :  { %22 = dma.hbm_to_vmem [thread:$0]  %s15_s14, 16, %s17_s16, [#allocation4], %s766_s17, %s766_s17, %s767_s18  }
   0x6   :  { %26 = vsyncadd [#allocation6], 384  ;;  %s27_s21 = sshll.u32 %s978_s1, 4  ;;  %s768_s22 = smov [#allocation5]   ;;  %s28_s21 = int_to_ptr.hbm [resolvable:$true] %s27_s21 }
   0x7   :  { %s29_s23 = sshll.u32 %s768_s22, 4  ;;  %s769_s24 = smov 64   ;;  %s30_s23 = int_to_ptr.vmem [resolvable:$true] %s29_s23 }
   0x8   :  { %s770_s25 = smov 4  }
   0x9   :  { %35 = dma.hbm_to_vmem [thread:$0]  %s28_s21, 128, %s30_s23, [#allocation6], %s769_s24, %s769_s24, %s770_s25  }
   0xa   :  { %39 = vsyncadd [#allocation6], 1536  ;;  %s40_s27 = sshll.u32 %s979_s2, 4  ;;  %s771_s28 = smov [#allocation7]   ;;  %s41_s27 = int_to_ptr.hbm [resolvable:$true] %s40_s27 }
   0xb   :  { %s42_s29 = sshll.u32 %s771_s28, 4  ;;  %s43_s29 = int_to_ptr.vmem [resolvable:$true] %s42_s29 }
   0xc   :  { %48 = dma.hbm_to_vmem [thread:$0]  %s41_s27, 512, %s43_s29, [#allocation6], %s769_s24, %s769_s24, %s770_s25  }
   0xd   :  { %761 = dma.done.wait [#allocation4], 64  }
   0xe   :  { %762 = vsyncadd [#allocation4], 4294967232 }
   0xf   :  { %763 = dma.done.wait [#allocation6], 2560  }
  0x10   :  { %764 = vsyncadd [#allocation6], 4294964736  ;;  %v62_v0 = vld [vmem:[#allocation3 + $0x1] sm:$0x1]  ;;  %v61_v1 = vld [vmem:[#allocation3] sm:$0x1] }
  0x11   :  { %v66_v2 = vunpack.c.l.bf16 %v62_v0  ;;  %vm85_vm0 = vcmask 1040384   ;;  %vm87_vm1 = vcmask 1042434   ;;  %v663_v3 = vld [vmem:[#allocation7 + $0x20] sm:$0xff]   ;;  %v65_v4 = vunpack.c.l.bf16 %v61_v1  ;;  %v660_v5 = vld [vmem:[#allocation7 + $0x8] sm:$0xff]   ;;  %v661_v28 = vld [vmem:[#allocation7 + $0x10] sm:$0xff]  }
  0x12   :  { %vm89_vm2 = vcmask 1041408   ;;  %vm91_vm3 = vcmask 1041409   ;;  %vm93_vm4 = vcmask 1043459   ;;  %vm95_vm5 = vcmask 1042433   ;;  %v594_v10 = vld [vmem:[#allocation7] sm:$0xff]   ;;  %v662_v39 = vld [vmem:[#allocation7 + $0x18] sm:$0xff]  }
  0x13   :  { %v76_v6 = vrot.slane %v66_v2, 1  ;;  %v77_v7 = vrot.slane %v66_v2, 2  ;;  %v78_v8 = vrot.slane %v66_v2, 3  ;;  %v73_v9 = vrot.slane %v65_v4, 1  ;;  %v664_v49 = vld [vmem:[#allocation7 + $0x28] sm:$0xff]   ;;  %v665_v51 = vld [vmem:[#allocation7 + $0x30] sm:$0xff]  }
  0x14   :  { %v612_v11 = vunpack.c.h.bf16 %v663_v3  ;;  %v74_v12 = vrot.slane %v65_v4, 2  ;;  %v75_v13 = vrot.slane %v65_v4, 3  ;;  %v599_v14 = vunpack.c.l.bf16 %v660_v5  ;;  %v63_v52 = vld [vmem:[#allocation3 + $0x2] sm:$0x1]  ;;  %v64_v1 = vld [vmem:[#allocation3 + $0x3] sm:$0x1] }
  0x15   :  { %v98_v15 = vsel %vm85_vm0, %v66_v2, %v76_v6  ;;  %v99_v16 = vsel %vm87_vm1, %v77_v7, %v78_v8  ;;  %v86_v17 = vsel %vm85_vm0, %v65_v4, %v73_v9  ;;  %v92_v18 = vsel %vm91_vm3, %v65_v4, %v73_v9  ;;  %v666_v61 = vld [vmem:[#allocation7 + $0x38] sm:$0xff]  }
  0x16   :  { %v100_v19 = vsel %vm89_vm2, %v98_v15, %v99_v16  ;;  %v88_v20 = vsel %vm87_vm1, %v74_v12, %v75_v13  ;;  %v595_v21 = vunpack.c.l.bf16 %v594_v10  ;;  %v94_v22 = vsel %vm93_vm4, %v74_v12, %v75_v13 }
  0x17   :  { %v809_v23 = vperm.slane %v100_v19, 0  ;;  %v90_v24 = vsel %vm89_vm2, %v86_v17, %v88_v20  ;;  %v96_v25 = vsel %vm95_vm5, %v92_v18, %v94_v22  ;;  %v603_v33 = vunpack.c.l.bf16 %v661_v28  ;;  %v667_v18 = vld [vmem:[#allocation7 + $0x40] sm:$0xff]  }
  0x18   :  { %v813_v26 = vperm.slane %v90_v24, 0  ;;  %v97_v27 = vrot.slane %v96_v25, 1  ;;  %v600_v34 = vunpack.c.h.bf16 %v660_v5  ;;  %v596_v35 = vunpack.c.h.bf16 %v594_v10  ;;  %v578_v19 = vld [vmem:[#allocation5] sm:$0xff]  }
  0x19   :  { %v280_v29 = vmul.f32 %v612_v11, %v809_v23  ;;  %v101_v40 = vsel %vm91_vm3, %v66_v2, %v76_v6  ;;  %v102_v41 = vsel %vm93_vm4, %v77_v7, %v78_v8  ;;  %v604_v42 = vunpack.c.h.bf16 %v661_v28 }
  0x1a   :  { %v273_v30 = vmul.f32 %v599_v14, %v813_v26  ;;  %v271_v31 = vmul.f32 %v595_v21, %v813_v26  ;;  %v818_v32 = vperm.slane %v97_v27, 0  ;;  %v274_v37 = vmul.f32 %v600_v34, %v813_v26 }
  0x1b   :  { %321 = vadd.xlane.f32.xlu1 %v280_v29  ;;  %v272_v38 = vmul.f32 %v596_v35, %v813_v26  ;;  %v607_v43 = vunpack.c.l.bf16 %v662_v39  ;;  %v611_v44 = vunpack.c.l.bf16 %v663_v3  ;;  %v103_v45 = vsel %vm95_vm5, %v101_v40, %v102_v41  ;;  %v668_v29 = vld [vmem:[#allocation7 + $0x48] sm:$0xff]   ;;  %v669_v40 = vld [vmem:[#allocation7 + $0x50] sm:$0xff]  }
  0x1c   :  { %307 = vadd.xlane.f32.xlu2 %v273_v30  ;;  %303 = vadd.xlane.f32.xlu0 %v271_v31  ;;  %v275_v36 = vmul.f32 %v603_v33, %v818_v32  ;;  %v276_v46 = vmul.f32 %v604_v42, %v818_v32  ;;  %v104_v50 = vrot.slane %v103_v45, 1  ;;  %v615_v53 = vunpack.c.l.bf16 %v664_v49  ;;  %v657_v41 = vld [vmem:[#allocation5 + $0x8] sm:$0xff]  }
  0x1d   :  { %v277_v47 = vmul.f32 %v607_v43, %v818_v32  ;;  %v279_v48 = vmul.f32 %v611_v44, %v809_v23  ;;  %v619_v55 = vunpack.c.l.bf16 %v665_v51  ;;  %v608_v56 = vunpack.c.h.bf16 %v662_v39 }
  0x1e   :  { %v829_v54 = vperm.slane %v104_v50, 0  ;;  %v67_v57 = vunpack.c.l.bf16 %v63_v52  ;;  %v281_v58 = vmul.f32 %v615_v53, %v809_v23  ;;  %v834_v2 = vunpack.c.l.bf16 %v64_v1 }
  0x1f   :  { %v278_v60 = vmul.f32 %v608_v56, %v818_v32  ;;  %v616_v3 = vunpack.c.h.bf16 %v664_v49  ;;  %v623_v4 = vunpack.c.l.bf16 %v666_v61  ;;  %v620_v5 = vunpack.c.h.bf16 %v665_v51  ;;  %v670_v49 = vld [vmem:[#allocation7 + $0x58] sm:$0xff]  }
  0x20   :  { %v283_v59 = vmul.f32 %v619_v55, %v829_v54  ;;  %v79_v62 = vrot.slane %v67_v57, 1  ;;  %v80_v63 = vrot.slane %v67_v57, 2  ;;  %v81_v0 = vrot.slane %v67_v57, 3 }
  0x21   :  { %v82_v6 = vrot.slane %v834_v2, 1  ;;  %v83_v7 = vrot.slane %v834_v2, 2  ;;  %v84_v8 = vrot.slane %v834_v2, 3  ;;  %v282_v13 = vmul.f32 %v616_v3, %v809_v23 }
  0x22   :  { %v105_v9 = vsel %vm85_vm0, %v67_v57, %v79_v62  ;;  %v106_v10 = vsel %vm87_vm1, %v80_v63, %v81_v0  ;;  %v285_v15 = vmul.f32 %v623_v4, %v829_v54  ;;  %v284_v16 = vmul.f32 %v620_v5, %v829_v54  ;;  %v673_v4 = vld [vmem:[#allocation7 + $0x70] sm:$0xff]   ;;  %v672_v5 = vld [vmem:[#allocation7 + $0x68] sm:$0xff]  }
  0x23   :  { %311 = vadd.xlane.f32.xlu1 %v275_v36  ;;  %v112_v11 = vsel %vm85_vm0, %v834_v2, %v82_v6  ;;  %v113_v12 = vsel %vm87_vm1, %v83_v7, %v84_v8  ;;  %v107_v17 = vsel %vm89_vm2, %v105_v9, %v106_v10  ;;  %v628_v21 = vunpack.c.h.bf16 %v667_v18 }
  0x24   :  { %309 = vadd.xlane.f32.xlu2 %v274_v37  ;;  %305 = vadd.xlane.f32.xlu0 %v272_v38  ;;  %v114_v14 = vsel %vm89_vm2, %v112_v11, %v113_v12  ;;  %v853_v20 = vperm.slane %v107_v17, 0  ;;  %v627_v22 = vunpack.c.l.bf16 %v667_v18  ;;  %v579_v24 = vunpack.c.l.bf16 %v578_v19  ;;  %v658_v12 = vld [vmem:[#allocation5 + $0x10] sm:$0xff]  }
  0x25   :  { %v108_v30 = vsel %vm91_vm3, %v67_v57, %v79_v62  ;;  %v109_v31 = vsel %vm93_vm4, %v80_v63, %v81_v0  ;;  %v624_v33 = vunpack.c.h.bf16 %v666_v61  ;;  %v580_v34 = vunpack.c.h.bf16 %v578_v19  ;;  %v659_v19 = vld [vmem:[#allocation5 + $0x18] sm:$0xff]  }
  0x26   :  { %v288_v25 = vmul.f32 %v628_v21, %v853_v20  ;;  %v287_v27 = vmul.f32 %v627_v22, %v853_v20  ;;  %v151_v28 = vmul.f32 %v579_v24, %v813_v26  ;;  %v631_v35 = vunpack.c.l.bf16 %v668_v29 }
  0x27   :  { %v110_v36 = vsel %vm95_vm5, %v108_v30, %v109_v31  ;;  %v286_v37 = vmul.f32 %v624_v33, %v829_v54  ;;  %v152_v39 = vmul.f32 %v580_v34, %v818_v32  ;;  %v636_v43 = vunpack.c.h.bf16 %v669_v40  ;;  %v671_v32 = vld [vmem:[#allocation7 + $0x60] sm:$0xff]  }
  0x28   :  { %v111_v38 = vrot.slane %v110_v36, 1  ;;  %v289_v26 = vmul.f32 %v631_v35, %v853_v20  ;;  %v635_v44 = vunpack.c.l.bf16 %v669_v40  ;;  %v583_v45 = vunpack.c.l.bf16 %v657_v41 }
  0x29   :  { %v639_v50 = vunpack.c.l.bf16 %v670_v49  ;;  %v632_v51 = vunpack.c.h.bf16 %v668_v29  ;;  %v141_v52 = vperm.slane %v114_v14, 0  ;;  %v643_v53 = vunpack.c.l.bf16 %v671_v32 }
  0x2a   :  { %v864_v42 = vperm.slane %v111_v38, 0  ;;  %v640_v61 = vunpack.c.h.bf16 %v670_v49  ;;  %v587_v14 = vunpack.c.l.bf16 %v658_v12  ;;  %v588_v22 = vunpack.c.h.bf16 %v658_v12 }
  0x2b   :  { %313 = vadd.xlane.f32.xlu1 %v276_v46  ;;  %v290_v56 = vmul.f32 %v632_v51, %v853_v20  ;;  %v295_v57 = vmul.f32 %v643_v53, %v141_v52  ;;  %v591_v24 = vunpack.c.l.bf16 %v659_v19  ;;  %v592_v29 = vunpack.c.h.bf16 %v659_v19 }
  0x2c   :  { %315 = vadd.xlane.f32.xlu2 %v277_v47  ;;  %319 = vadd.xlane.f32.xlu0 %v279_v48  ;;  %v292_v46 = vmul.f32 %v636_v43, %v864_v42  ;;  %v291_v47 = vmul.f32 %v635_v44, %v864_v42  ;;  %v153_v48 = vmul.f32 %v583_v45, %v809_v23  ;;  %v183_v31 = vlaneseq }
  0x2d   :  { %v293_v55 = vmul.f32 %v639_v50, %v864_v42  ;;  %v116_v23 = vsel %vm93_vm4, %v83_v7, %v84_v8  ;;  %v294_v3 = vmul.f32 %v640_v61, %v864_v42  ;;  %v647_v7 = vunpack.c.l.bf16 %v672_v5 }
  0x2e   :  { %v652_v8 = vunpack.c.h.bf16 %v673_v4  ;;  %v155_v17 = vmul.f32 %v587_v14, %v853_v20  ;;  %v883_v35 = vand.u32 127, %v183_v31  ;;  %vm435_vm6 = vcmask 195712  }
  0x2f   :  { %v297_v10 = vmul.f32 %v647_v7, %v141_v52  ;;  %vm439_vm7 = vcmask 261312   ;;  %vm443_vm8 = vcmask 326912   ;;  %vm196_vm9 = vcmask 1044484  }
  0x30   :  { %v886_v36 = vadd.s32 4294967288, %v883_v35  ;;  %v895_v43 = vadd.s32 4294967280, %v883_v35  ;;  %vm198_vm10 = vcmask 1045509   ;;  %vm200_vm11 = vcmask 1046534  }
  0x31   :  { %vm202_vm12 = vcmask 1047559   ;;  %vm205_vm13 = vcmask 64512   ;;  %vm502_vm14 = vcmask 326720   ;;  %vm519_vm0 = vcmask 326656  }
  0x32   :  { %vm532_vm2 = vcmask 7168  }
  0x33   :  { %323 = vadd.xlane.f32.xlu1 %v281_v58  ;;  %v115_v58 = vsel %vm91_vm3, %v834_v2, %v82_v6  ;;  %v651_v6 = vunpack.c.l.bf16 %v673_v4 }
  0x34   :  { %327 = vadd.xlane.f32.xlu2 %v283_v59  ;;  %317 = vadd.xlane.f32.xlu0 %v278_v60  ;;  %v584_v59 = vunpack.c.h.bf16 %v657_v41  ;;  %v644_v60 = vunpack.c.h.bf16 %v671_v32  ;;  %v117_v62 = vsel %vm95_vm5, %v115_v58, %v116_v23 }
  0x35   :  { %v118_v0 = vrot.slane %v117_v62, 1 }
  0x36   :  { %v154_v63 = vmul.f32 %v584_v59, %v829_v54  ;;  %v296_v1 = vmul.f32 %v644_v60, %v141_v52  ;;  %v648_v54 = vunpack.c.h.bf16 %v672_v5 }
  0x37   :  { %v142_v2 = vperm.slane %v118_v0, 0 }
  0x39   :  { %v299_v9 = vmul.f32 %v651_v6, %v142_v2  ;;  %v300_v11 = vmul.f32 %v652_v8, %v142_v2  ;;  %v158_v30 = vmul.f32 %v592_v29, %v142_v2 }
  0x3b   :  { %325 = vadd.xlane.f32.xlu1 %v282_v13  ;;  %v674_v13 = vld [vmem:[#allocation7 + $0x78] sm:$0xff]  }
  0x3c   :  { %331 = vadd.xlane.f32.xlu2 %v285_v15  ;;  %329 = vadd.xlane.f32.xlu0 %v284_v16  ;;  %v655_v15 = vunpack.c.l.bf16 %v674_v13  ;;  %v298_v16 = vmul.f32 %v648_v54, %v141_v52  ;;  %v656_v21 = vunpack.c.h.bf16 %v674_v13 }
  0x3e   :  { %v301_v18 = vmul.f32 %v655_v15, %v142_v2 }
  0x43   :  { %337 = vadd.xlane.f32.xlu1 %v288_v25  ;;  %v302_v25 = vmul.f32 %v656_v21, %v142_v2 }
  0x44   :  { %335 = vadd.xlane.f32.xlu0 %v287_v27  ;;  %159 = vadd.xlane.f32.xlu2 %v151_v28  ;;  %v156_v27 = vmul.f32 %v588_v22, %v864_v42  ;;  %v157_v28 = vmul.f32 %v591_v24, %v141_v52 }
  0x4b   :  { %333 = vadd.xlane.f32.xlu1 %v286_v37 }
  0x4c   :  { %161 = vadd.xlane.f32.xlu0 %v152_v39  ;;  %339 = vadd.xlane.f32.xlu2 %v289_v26  ;;  %v889_v39 = vadd.s32 4294967264, %v883_v35  ;;  %v892_v26 = vadd.s32 4294967272, %v883_v35 }
  0x53   :  { %345 = vadd.xlane.f32.xlu1 %v292_v46 }
  0x54   :  { %343 = vadd.xlane.f32.xlu0 %v291_v47  ;;  %163 = vadd.xlane.f32.xlu2 %v153_v48 }
  0x5b   :  { %347 = vadd.xlane.f32.xlu1 %v293_v55 }
  0x5c   :  { %341 = vadd.xlane.f32.xlu0 %v290_v56  ;;  %351 = vadd.xlane.f32.xlu2 %v295_v57 }
  0x63   :  { %165 = vadd.xlane.f32.xlu1 %v154_v63 }
  0x64   :  { %353 = vadd.xlane.f32.xlu0 %v296_v1  ;;  %349 = vadd.xlane.f32.xlu2 %v294_v3 }
  0x6b   :  { %359 = vadd.xlane.f32.xlu1 %v299_v9 }
  0x6c   :  { %355 = vadd.xlane.f32.xlu0 %v297_v10  ;;  %361 = vadd.xlane.f32.xlu2 %v300_v11 }
  0x73   :  { %357 = vadd.xlane.f32.xlu1 %v298_v16 }
  0x74   :  { %167 = vadd.xlane.f32.xlu0 %v155_v17  ;;  %363 = vadd.xlane.f32.xlu2 %v301_v18 }
  0x7b   :  { %365 = vadd.xlane.f32.xlu1 %v302_v25 }
  0x7c   :  { %169 = vadd.xlane.f32.xlu0 %v156_v27  ;;  %171 = vadd.xlane.f32.xlu2 %v157_v28 }
  0x84   :  { %173 = vadd.xlane.f32.xlu0 %v158_v30 }
  0x8e   :  { %v322_v20 = vpop.xlane.xlu1 %321 }
  0x8f   :  { %v308_v33 = vpop.xlane.xlu2 %307  ;;  %v304_v34 = vpop.xlane.xlu0 %303  ;;  %v376_v52 = vsub.f32 0.0, %v322_v20 }
  0x90   :  { %v367_v37 = vsub.f32 0.0, %v304_v34  ;;  %v369_v40 = vsub.f32 0.0, %v308_v33 }
  0x91   :  { %v453_v62 = vperm.slane %v376_v52, %v895_v43 }
  0x92   :  { %v432_v46 = vperm.slane %v367_v37, %v886_v36  ;;  %v438_v49 = vperm.slane %v369_v40, %v892_v26 }
  0x96   :  { %v312_v38 = vpop.xlane.xlu1 %311 }
  0x97   :  { %v310_v41 = vpop.xlane.xlu2 %309  ;;  %v306_v42 = vpop.xlane.xlu0 %305  ;;  %v371_v50 = vsub.f32 0.0, %v312_v38 }
  0x98   :  { %v370_v44 = vsub.f32 0.0, %v310_v41  ;;  %v368_v45 = vsub.f32 0.0, %v306_v42 }
  0x99   :  { %v445_v60 = vperm.slane %v371_v50, %v886_v36 }
  0x9a   :  { %v442_v47 = vperm.slane %v370_v44, %v889_v39  ;;  %v434_v48 = vperm.slane %v368_v45, %v895_v43 }
  0x9c   :  { %v436_v32 = vsel %vm435_vm6, %v434_v48, %v432_v46 }
  0x9d   :  { %v440_v51 = vsel %vm439_vm7, %v438_v49, %v436_v32 }
  0x9e   :  { %v314_v53 = vpop.xlane.xlu1 %313  ;;  %v444_v55 = vsel %vm443_vm8, %v442_v47, %v440_v51 }
  0x9f   :  { %v372_v56 = vsub.f32 0.0, %v314_v53  ;;  %v316_v57 = vpop.xlane.xlu2 %315  ;;  %v320_v58 = vpop.xlane.xlu0 %319 }
  0xa0   :  { %v373_v23 = vsub.f32 0.0, %v316_v57  ;;  %v375_v59 = vsub.f32 0.0, %v320_v58 }
  0xa1   :  { %v446_v61 = vperm.slane %v372_v56, %v895_v43 }
  0xa2   :  { %v448_v63 = vperm.slane %v373_v23, %v892_v26  ;;  %v452_v0 = vperm.slane %v375_v59, %v886_v36 }
  0xa3   :  { %v447_v1 = vsel %vm435_vm6, %v446_v61, %v445_v60 }
  0xa4   :  { %v449_v3 = vsel %vm439_vm7, %v448_v63, %v447_v1  ;;  %v454_v4 = vsel %vm435_vm6, %v453_v62, %v452_v0 }
  0xa6   :  { %v324_v5 = vpop.xlane.xlu1 %323 }
  0xa7   :  { %v377_v2 = vsub.f32 0.0, %v324_v5  ;;  %v328_v6 = vpop.xlane.xlu2 %327  ;;  %v318_v7 = vpop.xlane.xlu0 %317 }
  0xa8   :  { %v374_v8 = vsub.f32 0.0, %v318_v7  ;;  %v379_v12 = vsub.f32 0.0, %v328_v6 }
  0xa9   :  { %v455_v9 = vperm.slane %v377_v2, %v892_v26 }
  0xaa   :  { %v450_v10 = vperm.slane %v374_v8, %v889_v39  ;;  %v459_v18 = vperm.slane %v379_v12, %v886_v36 }
  0xab   :  { %v456_v11 = vsel %vm439_vm7, %v455_v9, %v454_v4 }
  0xac   :  { %v451_v13 = vsel %vm443_vm8, %v450_v10, %v449_v3 }
  0xad   :  { %v494_v54 = vsel %vm91_vm3, %v451_v13, %v444_v55 }
  0xae   :  { %v326_v14 = vpop.xlane.xlu1 %325 }
  0xaf   :  { %v378_v15 = vsub.f32 0.0, %v326_v14  ;;  %v332_v16 = vpop.xlane.xlu2 %331  ;;  %v330_v17 = vpop.xlane.xlu0 %329 }
  0xb0   :  { %v380_v19 = vsub.f32 0.0, %v330_v17  ;;  %v381_v31 = vsub.f32 0.0, %v332_v16 }
  0xb1   :  { %v457_v21 = vperm.slane %v378_v15, %v889_v39 }
  0xb2   :  { %v460_v22 = vperm.slane %v380_v19, %v895_v43  ;;  %v462_v20 = vperm.slane %v381_v31, %v892_v26 }
  0xb3   :  { %v458_v24 = vsel %vm443_vm8, %v457_v21, %v456_v11 }
  0xb4   :  { %v495_v25 = vsel %vm87_vm1, %v458_v24, %v494_v54  ;;  %v461_v27 = vsel %vm435_vm6, %v460_v22, %v459_v18 }
  0xb5   :  { %v463_v41 = vsel %vm439_vm7, %v462_v20, %v461_v27 }
  0xb6   :  { %v338_v28 = vpop.xlane.xlu1 %337 }
  0xb7   :  { %v336_v29 = vpop.xlane.xlu0 %335  ;;  %v160_v30 = vpop.xlane.xlu2 %159  ;;  %v384_v57 = vsub.f32 0.0, %v338_v28 }
  0xb8   :  { %v383_v58 = vsub.f32 0.0, %v336_v29  ;;  %v185_v62 = vperm.slane %v160_v30, %v883_v35 }
  0xb9   :  { %v467_v60 = vperm.slane %v384_v57, %v895_v43 }
  0xba   :  { %v466_v61 = vperm.slane %v383_v58, %v886_v36 }
  0xbc   :  { %v468_v2 = vsel %vm435_vm6, %v467_v60, %v466_v61 }
  0xbe   :  { %v334_v33 = vpop.xlane.xlu1 %333 }
  0xbf   :  { %v382_v34 = vsub.f32 0.0, %v334_v33  ;;  %v162_v37 = vpop.xlane.xlu0 %161  ;;  %v340_v38 = vpop.xlane.xlu2 %339 }
  0xc0   :  { %v186_v63 = vperm.slane %v162_v37, %v883_v35  ;;  %v385_v1 = vsub.f32 0.0, %v340_v38 }
  0xc1   :  { %v464_v40 = vperm.slane %v382_v34, %v889_v39 }
  0xc2   :  { %v193_v6 = vsel %vm91_vm3, %v186_v63, %v185_v62  ;;  %v469_v9 = vperm.slane %v385_v1, %v892_v26 }
  0xc3   :  { %v465_v42 = vsel %vm443_vm8, %v464_v40, %v463_v41 }
  0xc4   :  { %v928_v44 = vsel %vm93_vm4, %v465_v42, %v495_v25  ;;  %v470_v33 = vsel %vm439_vm7, %v469_v9, %v468_v2 }
  0xc6   :  { %v346_v45 = vpop.xlane.xlu1 %345 }
  0xc7   :  { %v344_v46 = vpop.xlane.xlu0 %343  ;;  %v164_v47 = vpop.xlane.xlu2 %163  ;;  %v388_v3 = vsub.f32 0.0, %v346_v45 }
  0xc8   :  { %v387_v4 = vsub.f32 0.0, %v344_v46  ;;  %v187_v54 = vperm.slane %v164_v47, %v883_v35 }
  0xc9   :  { %v474_v13 = vperm.slane %v388_v3, %v895_v43 }
  0xca   :  { %v473_v17 = vperm.slane %v387_v4, %v886_v36  ;;  %v194_v42 = vsel %vm87_vm1, %v187_v54, %v193_v6 }
  0xcc   :  { %v475_v41 = vsel %vm435_vm6, %v474_v13, %v473_v17  ;;  %v772_v13 = vmov 8.0  }
  0xce   :  { %v348_v48 = vpop.xlane.xlu1 %347 }
  0xcf   :  { %v342_v49 = vpop.xlane.xlu0 %341  ;;  %v352_v32 = vpop.xlane.xlu2 %351  ;;  %v389_v5 = vsub.f32 0.0, %v348_v48 }
  0xd0   :  { %v386_v10 = vsub.f32 0.0, %v342_v49  ;;  %v391_v11 = vsub.f32 0.0, %v352_v32 }
  0xd1   :  { %v476_v18 = vperm.slane %v389_v5, %v892_v26 }
  0xd2   :  { %v471_v29 = vperm.slane %v386_v10, %v889_v39  ;;  %v480_v30 = vperm.slane %v391_v11, %v886_v36 }
  0xd4   :  { %v472_v49 = vsel %vm443_vm8, %v471_v29, %v470_v33 }
  0xd5   :  { %v497_v57 = vsel %vm196_vm9, %v472_v49, %v928_v44 }
  0xd6   :  { %v166_v50 = vpop.xlane.xlu1 %165 }
  0xd7   :  { %v354_v51 = vpop.xlane.xlu0 %353  ;;  %v350_v52 = vpop.xlane.xlu2 %349  ;;  %v188_v24 = vperm.slane %v166_v50, %v883_v35 }
  0xd8   :  { %v392_v12 = vsub.f32 0.0, %v354_v51  ;;  %v390_v14 = vsub.f32 0.0, %v350_v52 }
  0xd9   :  { %v195_v46 = vsel %vm93_vm4, %v188_v24, %v194_v42 }
  0xda   :  { %v481_v31 = vperm.slane %v392_v12, %v895_v43  ;;  %v478_v34 = vperm.slane %v390_v14, %v889_v39 }
  0xdc   :  { %v482_v32 = vsel %vm435_vm6, %v481_v31, %v480_v30 }
  0xde   :  { %v360_v53 = vpop.xlane.xlu1 %359 }
  0xdf   :  { %v356_v55 = vpop.xlane.xlu0 %355  ;;  %v362_v56 = vpop.xlane.xlu2 %361  ;;  %v395_v7 = vsub.f32 0.0, %v360_v53 }
  0xe0   :  { %v396_v8 = vsub.f32 0.0, %v362_v56  ;;  %v393_v15 = vsub.f32 0.0, %v356_v55 }
  0xe1   :  { %v487_v25 = vperm.slane %v395_v7, %v886_v36 }
  0xe2   :  { %v488_v27 = vperm.slane %v396_v8, %v895_v43  ;;  %v483_v37 = vperm.slane %v393_v15, %v892_v26  ;;  %v477_v43 = vsel %vm439_vm7, %v476_v18, %v475_v41 }
  0xe3   :  { %v479_v52 = vsel %vm443_vm8, %v478_v34, %v477_v43 }
  0xe4   :  { %v489_v47 = vsel %vm435_vm6, %v488_v27, %v487_v25 }
  0xe6   :  { %v358_v23 = vpop.xlane.xlu1 %357 }
  0xe7   :  { %v168_v59 = vpop.xlane.xlu0 %167  ;;  %v364_v0 = vpop.xlane.xlu2 %363  ;;  %v394_v19 = vsub.f32 0.0, %v358_v23 }
  0xe8   :  { %v397_v21 = vsub.f32 0.0, %v364_v0  ;;  %v189_v20 = vperm.slane %v168_v59, %v883_v35  ;;  %v498_v59 = vsel %vm198_vm10, %v479_v52, %v497_v57 }
  0xe9   :  { %v485_v45 = vperm.slane %v394_v19, %v889_v39 }
  0xea   :  { %v490_v36 = vperm.slane %v397_v21, %v892_v26  ;;  %v197_v50 = vsel %vm196_vm9, %v189_v20, %v195_v46  ;;  %v484_v26 = vsel %vm439_vm7, %v483_v37, %v482_v32 }
  0xeb   :  { %v486_v55 = vsel %vm443_vm8, %v485_v45, %v484_v26 }
  0xec   :  { %v491_v56 = vsel %vm439_vm7, %v490_v36, %v489_v47  ;;  %v499_v61 = vsel %vm200_vm11, %v486_v55, %v498_v59 }
  0xee   :  { %v366_v16 = vpop.xlane.xlu1 %365 }
  0xef   :  { %v170_v22 = vpop.xlane.xlu0 %169  ;;  %v398_v28 = vsub.f32 0.0, %v366_v16  ;;  %v172_v40 = vpop.xlane.xlu2 %171 }
  0xf0   :  { %v190_v38 = vperm.slane %v170_v22, %v883_v35  ;;  %v191_v51 = vperm.slane %v172_v40, %v883_v35 }
  0xf1   :  { %v492_v48 = vperm.slane %v398_v28, %v889_v39 }
  0xf2   :  { %v199_v53 = vsel %vm198_vm10, %v190_v38, %v197_v50 }
  0xf3   :  { %v493_v58 = vsel %vm443_vm8, %v492_v48, %v491_v56  ;;  %v201_v60 = vsel %vm200_vm11, %v191_v51, %v199_v53 }
  0xf4   :  { %v500_v63 = vsel %vm202_vm12, %v493_v58, %v499_v61 }
  0xf7   :  { %v174_v39 = vpop.xlane.xlu0 %173 }
  0xf8   :  { %v192_v23 = vperm.slane %v174_v39, %v883_v35 }
  0xfa   :  { %v203_v62 = vsel %vm202_vm12, %v192_v23, %v201_v60 }
  0xfb   :  { %206 = vst.msk [vmem:[#allocation2] sm:$0xff] %vm205_vm13, %v203_v62 }
  0xfc   :  { %503 = vst.msk [vmem:[#allocation2] sm:$0xff] %vm502_vm14, %v500_v63 }
 0x103   :  { %v504_v0 = vld [vmem:[#allocation2] sm:$0xff] }
 0x104   :  { %v505_v1 = vand.u32 2147483647, %v504_v0  ;;  %v517_v9 = vmin.f32 %v504_v0, 0.0 }
 0x106   :  { %v506_v3 = vsub.f32 0.0, %v505_v1 }
 0x108   :  { %v507_v4 = vmul.f32 1.442695, %v506_v3 }
 0x10a   :  { %683 = vpow2.f32 %v507_v4 }
 0x110   :  { %v684_v44 = vpop.eup %683 }
 0x111   :  { %v513_v5 = vadd.f32 1.0, %v684_v44  ;;  %v510_v2 = vmul.f32 0.5, %v684_v44  ;;  %vm509_vm15 = vcmp.lt.f32.partialorder %v684_v44, 0.0001 }
 0x113   :  { %685 = vlog2.f32 %v513_v5  ;;  %v511_v6 = vmul.f32 %v684_v44, %v510_v2 }
 0x114   :  { %687 = vrcp.f32 %v772_v13 }
 0x115   :  { %v512_v7 = vsub.f32 %v684_v44, %v511_v6 }
 0x119   :  { %v686_v35 = vpop.eup %685 }
 0x11a   :  { %v515_v8 = vmul.f32 0.6931472, %v686_v35  ;;  %v688_v54 = vpop.eup %687 }
 0x11b   :  { %v525_v14 = vmul.f32 8.0, %v688_v54  ;;  %vm529_vm1 = vweird.f32 %v688_v54 }
 0x11c   :  { %v516_v10 = vsel %vm509_vm15, %v512_v7, %v515_v8 }
 0x11d   :  { %v518_v11 = vsub.f32 %v517_v9, %v516_v10  ;;  %v526_v15 = vsub.f32 1.0, %v525_v14 }
 0x11f   :  { %v520_v12 = vsel %vm519_vm0, %v518_v11, 0.0  ;;  %v527_v16 = vmul.f32 %v688_v54, %v526_v15 }
 0x120   :  { %521 = vadd.xlane.f32.xlu1 %v520_v12 }
 0x121   :  { %v528_v17 = vadd.f32 %v688_v54, %v527_v16 }
 0x123   :  { %v530_v18 = vsel %vm529_vm1, %v688_v54, %v528_v17 }
 0x193   :  { %v522_v19 = vpop.xlane.xlu1 %521 }
 0x194   :  { %v523_v21 = vsub.f32 0.0, %v522_v19 }
 0x196   :  { %v531_v22 = vmul.f32 %v530_v18, %v523_v21 }
 0x198   :  { %533 = vst.msk [vmem:[#allocation8] sm:$0xff] %vm532_vm2, %v531_v22 }
 0x19f   :  { %v552_v24 = vld [vmem:[#allocation8] sm:$0x3] }
 0x1a0   :  { %553 = vst [vmem:[%s980_s3] sm:$0x3] %v552_v24 }
 0x1a1   :  { %571 = vsyncpa [#allocation4], 1 }
 0x1a2   :  { %572 = vsyncpa [#allocation6], 1 }

</bundles_post_ra>
